<compile_context>
chip_gen: v6e
topology: v6e:2x2x1
jax: 0.10.0
libtpu: 0.0.40
codegen_flags: <defaults>
</compile_context>

<pallas_src>
import functools

import jax
import jax.numpy as jnp
from jax import lax
from jax.experimental import pallas as pl
from jax.experimental.pallas import tpu as pltpu


_ONEHOT_BUF_BYTES = 2 << 20   # cap on the f32 (tile_n, C) one-hot intermediate
_DMA_INFLIGHT = 8             # outstanding row DMAs in the gather path (power of 2)


def _round_up(a: int, b: int) -> int:
    return (a + b - 1) // b * b


def _vmem_capacity_bytes() -> int:
    try:
        return int(pltpu.get_tpu_info().vmem_capacity_bytes)
    except Exception:
        return 64 * 1024 * 1024  # v7x per-TC VMEM (smallest across v5e/v6e/v7x)


def _onehot_tile_n(n: int, c: int) -> int:
    # Cap the f32 (tile_n, C) one-hot intermediate around _ONEHOT_BUF_BYTES and
    # don't exceed 512 rows (amortizes grid-step overhead, fills MXU M on
    # v6e/v7x).  All candidates are multiples of 8.
    cap_rows = max(8, (_ONEHOT_BUF_BYTES // (4 * c)) // 8 * 8)
    return max(8, min(512, cap_rows, _round_up(n, 8)))


# ---------------------------------------------------------------------------
# Path A: table fits VMEM -> one-hot matmul on the MXU (table VMEM-resident).
# ---------------------------------------------------------------------------
def _onehot_kernel(idx_ref, emb_ref, out_ref):
    # idx_ref: (tile_n, 1) int32 -- flattened class indices for this tile
    # emb_ref: (C, Z)            -- full embedding table, VMEM-resident
    # out_ref: (tile_n, Z)       -- gathered rows
    idx = idx_ref[...]
    tile_n = idx.shape[0]
    c = emb_ref.shape[0]
    class_ids = lax.broadcasted_iota(jnp.int32, (tile_n, c), dimension=1)
    # 0/1 one-hot in the table's dtype (exact for f32 and bf16).
    one_hot = (class_ids == idx).astype(emb_ref.dtype)
    acc = jnp.dot(one_hot, emb_ref[...], preferred_element_type=jnp.float32)
    out_ref[...] = acc.astype(out_ref.dtype)


def _onehot_lookup(idx, table, tile_n, vmem_limit):
    n_pad = idx.shape[0]
    c, z = table.shape
    return pl.pallas_call(
        _onehot_kernel,
        out_shape=jax.ShapeDtypeStruct((n_pad, z), table.dtype),
        grid=(n_pad // tile_n,),
        in_specs=[
            pl.BlockSpec((tile_n, 1), lambda i: (i, 0)),
            # Constant index_map -> the table is fetched once and reused across
            # all grid steps (no re-DMA per step).
            pl.BlockSpec((c, z), lambda i: (0, 0)),
        ],
        out_specs=pl.BlockSpec((tile_n, z), lambda i: (i, 0)),
        compiler_params=pltpu.CompilerParams(
            dimension_semantics=("parallel",),
            vmem_limit_bytes=vmem_limit,
        ),
    )(idx.reshape(n_pad, 1), table)


# ---------------------------------------------------------------------------
# Path B: very large tables -> per-row DMA gather, table stays in HBM.
# Rows are DMA'd directly into the output block with an 8-deep semaphore ring.
# ---------------------------------------------------------------------------
def _dma_gather_kernel(idx_ref, table_hbm, out_ref, sems, *, n_rows):
    # idx_ref:   (n_pad,) int32 in SMEM (scalar prefetch)
    # table_hbm: (C, Z) table ref left in HBM (memory_space=pl.ANY)
    # out_ref:   (tile_n, Z) VMEM output block -- DMA destination
    # sems:      (_DMA_INFLIGHT,) DMA semaphore ring
    # n_rows:    static number of real (non-padding) rows overall
    tile_n = out_ref.shape[0]
    n_pad = idx_ref.shape[0]
    base = pl.program_id(0) * tile_n
    # Real rows in this tile; padding rows get no DMA (their output bytes are
    # sliced off by the wrapper).
    rows = jnp.minimum(n_rows - base, tile_n)

    def start_row(r, src_idx):
        pltpu.make_async_copy(
            table_hbm.at[pl.ds(src_idx, 1), :],
            out_ref.at[pl.ds(r, 1), :],
            sems.at[r & (_DMA_INFLIGHT - 1)],
        ).start()

    def wait_row(r):
        # Only the transfer size + semaphore matter for .wait(); a fixed-shape
        # source view avoids an extra SMEM index read here.
        pltpu.make_async_copy(
            table_hbm.at[pl.ds(0, 1), :],
            out_ref.at[pl.ds(r, 1), :],
            sems.at[r & (_DMA_INFLIGHT - 1)],
        ).wait()

    # Prologue: put up to _DMA_INFLIGHT row fetches in flight.
    for r in range(_DMA_INFLIGHT):
        @pl.when(r < rows)
        def _(r=r):
            start_row(r, idx_ref[base + r])

    # Steady state: retire row r, immediately refill the ring with row r+depth.
    def body(r, carry):
        nxt = r + _DMA_INFLIGHT
        # Read the next index from SMEM *before* the wait (a DMA wait breaks
        # SMEM store->load forwarding and would stall this scalar load).
        nxt_idx = idx_ref[jnp.minimum(base + nxt, n_pad - 1)]
        wait_row(r)

        @pl.when(nxt < rows)
        def _():
            start_row(nxt, nxt_idx)

        return carry

    lax.fori_loop(0, rows, body, 0)


def _dma_gather_lookup(idx, table, tile_n, n_rows):
    n_pad = idx.shape[0]
    c, z = table.shape
    grid_spec = pltpu.PrefetchScalarGridSpec(
        num_scalar_prefetch=1,
        grid=(n_pad // tile_n,),
        in_specs=[pl.BlockSpec(memory_space=pl.ANY)],  # table stays in HBM
        out_specs=pl.BlockSpec((tile_n, z), lambda i, idx_ref: (i, 0)),
        scratch_shapes=[pltpu.SemaphoreType.DMA((_DMA_INFLIGHT,))],
    )
    return pl.pallas_call(
        functools.partial(_dma_gather_kernel, n_rows=n_rows),
        out_shape=jax.ShapeDtypeStruct((n_pad, z), table.dtype),
        grid_spec=grid_spec,
        compiler_params=pltpu.CompilerParams(dimension_semantics=("parallel",)),
    )(idx, table)


# ---------------------------------------------------------------------------
# Wrapper: Encoder.forward(x) == style_shift(x) == table[x]
# ---------------------------------------------------------------------------
def encoder_forward(x, style_shift_weight, *, tile_n=None,
                    one_hot_max_classes=8192, force_path=None):
    """Pallas equivalent of Encoder.forward(x) == nn.Embedding(C, Z)(x).

    force_path: None (auto), "onehot", or "dma" (testing / manual override).
    one_hot_max_classes: upper bound on C for the one-hot MXU path (lower it,
    e.g. to 2048, on v5e where MXU throughput is ~4.7x lower).
    """
    orig_shape = x.shape
    c, z = style_shift_weight.shape
    table = style_shift_weight
    itemsize = jnp.dtype(table.dtype).itemsize

    idx = x.reshape(-1).astype(jnp.int32)
    n = idx.shape[0]
    if n == 0:
        return jnp.zeros(orig_shape + (z,), table.dtype)
    # nn.Embedding raises on out-of-range indices; we clamp so bad input cannot
    # cause an out-of-bounds DMA / hardware fault.  In-range input is unaffected.
    idx = jnp.clip(idx, 0, c - 1)

    vmem_cap = _vmem_capacity_bytes()
    table_bytes = c * z * itemsize

    def _onehot_vmem_need(t):
        return (2 * table_bytes            # table block (x2: possible double-buffer)
                + 2 * t * z * itemsize     # output block, double-buffered
                + 2 * t * 4                # index block, double-buffered
                + t * c * 4                # (tile_n, C) f32 one-hot intermediate
                + (4 << 20))               # headroom

    if force_path is None:
        t_probe = tile_n if tile_n is not None else _onehot_tile_n(n, c)
        use_onehot = (c <= one_hot_max_classes and
                      _onehot_vmem_need(t_probe) <= int(0.8 * vmem_cap))
    else:
        use_onehot = (force_path == "onehot")

    if use_onehot:
        t = tile_n if tile_n is not None else _onehot_tile_n(n, c)
        t = max(8, _round_up(t, 8))
        n_pad = _round_up(n, t)
        if n_pad != n:
            idx = jnp.pad(idx, (0, n_pad - n))  # padded rows gather class 0, sliced off
        vmem_limit = int(min(0.9 * vmem_cap, max(_onehot_vmem_need(t), 32 << 20)))
        out = _onehot_lookup(idx, table, t, vmem_limit)
    else:
        t = tile_n if tile_n is not None else min(128, _round_up(n, 8))
        t = max(8, _round_up(t, 8))
        n_pad = _round_up(n, t)
        if n_pad != n:
            idx = jnp.pad(idx, (0, n_pad - n))  # padding rows issue no DMAs
        out = _dma_gather_lookup(idx, table, t, n)

    if n_pad != n:
        out = out[:n]
    return out.reshape(orig_shape + (z,))


if __name__ == "__main__":
    key = jax.random.PRNGKey(0)
    k1, k2, k3, k4, k5, k6 = jax.random.split(key, 6)

    # 1) Small-class config (the module's intended use) -> VMEM-resident one-hot path.
    num_classes, z_dim = 10, 32
    batch, seq = 2, 8
    table = jax.random.normal(k1, (num_classes, z_dim), dtype=jnp.float32)
    x = jax.random.randint(k2, (batch, seq), 0, num_classes, dtype=jnp.int32)
    out = jax.block_until_ready(encoder_forward(x, table))
    assert out.shape == (batch, seq, z_dim), out.shape
    assert jnp.allclose(out, table[x], atol=1e-6), "one-hot path mismatch vs reference"

    # 2) Mid-size table (C=2048, ~256 KiB) -> now also VMEM-resident (raised threshold).
    num_classes2, z_dim2 = 2048, 32
    table2 = jax.random.normal(k3, (num_classes2, z_dim2), dtype=jnp.float32)
    x2 = jax.random.randint(k4, (4, 8), 0, num_classes2, dtype=jnp.int32)
    out2 = jax.block_until_ready(encoder_forward(x2, table2))
    assert out2.shape == (4, 8, z_dim2), out2.shape
    assert jnp.allclose(out2, table2[x2], atol=1e-6), "mid-size one-hot path mismatch"

    # 3) Force the HBM DMA-gather path (taken automatically only by very large
    #    tables) at small shapes, including a ragged last tile.
    num_classes3, z_dim3 = 64, 32
    table3 = jax.random.normal(k5, (num_classes3, z_dim3), dtype=jnp.float32)
    x3 = jax.random.randint(k6, (2, 9), 0, num_classes3, dtype=jnp.int32)  # n=18 -> padded tile
    out3 = jax.block_until_ready(
        encoder_forward(x3, table3, tile_n=8, force_path="dma"))
    assert out3.shape == (2, 9, z_dim3), out3.shape
    assert jnp.allclose(out3, table3[x3]), "DMA-gather path mismatch vs reference"

    print("KERNEL_OK")
</pallas_src>

<mosaic_0001>
module attributes {stable_mosaic.version = 11 : i64} {
  func.func @_onehot_kernel(%arg0: i32, %arg1: memref<16x1xi32, #tpu.memory_space<vmem>>, %arg2: memref<10x32xf32, #tpu.memory_space<vmem>>, %arg3: memref<16x32xf32, #tpu.memory_space<vmem>>) attributes {dimension_semantics = [#tpu.dimension_semantics<parallel>], iteration_bounds = array<i64: 1>, scalar_prefetch = 0 : i64, scratch_operands = 0 : i64, tpu.core_type = #tpu.core_type<tc>, window_params = [{transform_indices = @transform_0, window_bounds = array<i64: 16, 1>}, {pipeline_mode = #tpu.pipeline_mode<synchronous>, transform_indices = @transform_1, window_bounds = array<i64: 10, 32>}, {transform_indices = @transform_2, window_bounds = array<i64: 16, 32>}]} {
    %c0 = arith.constant 0 : index
    %c0_0 = arith.constant 0 : index
    %0 = vector.load %arg1[%c0, %c0_0] : memref<16x1xi32, #tpu.memory_space<vmem>>, vector<16x1xi32>
    %1 = tpu.iota {dimensions = array<i32: 1>} : vector<16x10xi32>
    %2 = vector.broadcast %0 : vector<16x1xi32> to vector<16x10xi32>
    %3 = arith.cmpi eq, %1, %2 : vector<16x10xi32>
    %4 = arith.extui %3 : vector<16x10xi1> to vector<16x10xi32>
    %5 = arith.sitofp %4 : vector<16x10xi32> to vector<16x10xf32>
    %c0_1 = arith.constant 0 : index
    %c0_2 = arith.constant 0 : index
    %6 = vector.load %arg2[%c0_1, %c0_2] : memref<10x32xf32, #tpu.memory_space<vmem>>, vector<10x32xf32>
    %cst = arith.constant dense<0.000000e+00> : vector<16x32xf32>
    %7 = tpu.matmul %5, %6, %cst {dimension_numbers = #tpu.dot_dimension_numbers<[1], [0], [0], [1], [0, 0, 1, 1], [], []>} : vector<16x10xf32>, vector<10x32xf32>, vector<16x32xf32> -> vector<16x32xf32>
    %c0_3 = arith.constant 0 : index
    %c0_4 = arith.constant 0 : index
    %8 = vector.load %arg3[%c0_3, %c0_4] : memref<16x32xf32, #tpu.memory_space<vmem>>, vector<16x32xf32>
    tpu.vector_store %arg3[%c0_3, %c0_4], %7 {strides = array<i32>} : memref<16x32xf32, #tpu.memory_space<vmem>>, vector<16x32xf32>,
    return
  }
  func.func @transform_0(%arg0: i32) -> (i32, i32) {
    %c0_i32 = arith.constant 0 : i32
    %c0_i32_0 = arith.constant 0 : i32
    return %arg0, %c0_i32 : i32, i32
  }
  func.func @transform_1(%arg0: i32) -> (i32, i32) {
    %c0_i32 = arith.constant 0 : i32
    %c0_i32_0 = arith.constant 0 : i32
    %c0_i32_1 = arith.constant 0 : i32
    return %c0_i32, %c0_i32_0 : i32, i32
  }
  func.func @transform_2(%arg0: i32) -> (i32, i32) {
    %c0_i32 = arith.constant 0 : i32
    %c0_i32_0 = arith.constant 0 : i32
    return %arg0, %c0_i32 : i32, i32
  }
}

</mosaic_0001>

<bundles_post_ra>
// kernel: tpu_custom_call.1
= control target key start
LH: loop header
LB: loop body
LE: loop exit
PB: predicated region body
PF: predicated region fallthrough
CT: control target
= control target key end

     0   :  { %vm37_vm0 = vcmask 1041408   ;;  %v179_v2 = vmov 0   ;;  %s214_s0 = inlined_call_operand.vmem [shape: s32[16,1], index: 0, kind: input, shape index: {}]   ;;  %s215_s1 = inlined_call_operand.vmem [shape: f32[10,32], index: 1, kind: input, shape index: {}]   ;;  %s216_s2 = inlined_call_operand.hbm [shape: f32[16,32], index: 2, kind: output, shape index: {}]  }
   0x1   :  { %v12_v0 = vld [vmem:[%s214_s0] sm:$0xff]  ;;  %v29_v1 = vld [vmem:[%s215_s1 + $0x8] sm:$0x3]  ;;  %156 = vset.pattern.permute.xlu0 %v179_v2 }
   0x2   :  { %144 = vmatprep.subr.msk.mxu0 %vm37_vm0, %v29_v1  ;;  %v28_v3 = vld [vmem:[%s215_s1] sm:$0xff] }
   0x3   :  { %7 = vsyncpa [#allocation3], 0  ;;  %17 = vperm.xlu0 %156, %v12_v0   ;;  %145 = vmatpush3.msk.msra.mxu0 %vm37_vm0, %v29_v1  ;;  %v13_v4 = vld [vmem:[%s214_s0 + $0x8] sm:$0xff]  ;;  %v14_v5 = vlaneseq  ;;  %vm30_vm1 = vcmask 80896   ;;  %v180_v8 = vmov 0.0   ;;  %s181_s1 = smov [#allocation2]  }
   0x4   :  { %146 = vmatprep.subr.mxu0 %v28_v3  ;;  %s124_s17 = sshll.u32 %s181_s1, 4  ;;  %vm116_vm4 = vcmask 261120   ;;  %s125_s17 = int_to_ptr.vmem [resolvable:$true] %s124_s17 }
   0x5   :  { %147 = vmatpush3.msra.mxu0 %v28_v3  ;;  %v15_v6 = vand.u32 127, %v14_v5  ;;  %s157_s0 = scalar_lea.vmem %s125_s17, 256  ;;  %p162_p1 = scmp.lt.s32.totalorder %s125_s17, %s125_s17 }
   0x6   :  { %p158_p0 = scmp.ne.s32.totalorder %s125_s17, %s157_s0  ;;  %p163_p2 = scmp.lt.s32.totalorder %s157_s0, %s157_s0 }
   0x7   :  { %20 = vperm.xlu0 %156, %v13_v4  }
   0x8   :  { %p164_p3 = por %p163_p2, %p162_p1 }
   0xa   :  { %p165_p4 = pnand %p164_p3, %p158_p0 }
  0x7e   :  { %v18_v7 = vpop.permute.xlu0 %17 }
  0x7f   :  { %vm22_vm2 = vcmp.eq.s32.totalorder %v15_v6, %v18_v7 }
  0x80   :  { %v135_v9 = vsel %vm22_vm2, 1.0, %v180_v8 }
  0x81   :  { %148 = vmatprep.mubr.msk.f32.mxu0 %vm30_vm1, %v135_v9 }
  0x82   :  { %v21_v10 = vpop.permute.xlu0 %20 }
  0x83   :  { %vm23_vm3 = vcmp.eq.s32.totalorder %v15_v6, %v21_v10 }
  0x84   :  { %v136_v11 = vsel %vm23_vm3, 1.0, %v180_v8 }
  0x85   :  { %149 = vmatmul.mubr.msk.f32.vlgmr.msra.gmra.mxu0 %vm30_vm1, %v136_v11 }
 0x145   :  { %v150_v12 = vpop.f32.mrf.mxu0 }
 0x146   :  { %118 = vst.msk [vmem:[#allocation2 + $0x8] sm:$0xff] %vm116_vm4, %v150_v12 }
 0x147   :  { %v107_v13 = vpop.f32.mrf.mxu0 }
 0x148   :  { %117 = vst.msk [vmem:[#allocation2] sm:$0xff] %vm116_vm4, %v107_v13 }
 0x149   :  { %168 = shalt.err (!%p165_p4)
}
 0x14a   :  { %s182_s18 = smov 128   ;;  %s183_s19 = smov 8  }
 0x14b   :  { %130 = dma.vmem_to_hbm [thread:$0]  %s125_s17, 256, %s216_s2, [#allocation3], %s182_s18, %s182_s18, %s183_s19  }
 0x14c   :  { %177 = dma.done.wait [#allocation3], 256  }
 0x14d   :  { %178 = vsyncadd [#allocation3], 4294967040 }
 0x14e   :  { %134 = vsyncpa [#allocation3], 1 }

</bundles_post_ra>
